<compile_context>
chip_gen: v5e
topology: v5e:2x2
jax: 0.10.0
libtpu: 0.0.40
codegen_flags: <defaults>
</compile_context>

<pallas_src>
import functools

import jax
import jax.numpy as jnp
from jax import lax
from jax.experimental import pallas as pl
from jax.experimental.pallas import tpu as pltpu

LANE = 128  # lane-dense feature padding target


# ----------------------------------------------------------------------------
# Compiler params: generation-aware VMEM limit
# ----------------------------------------------------------------------------
def _compiler_params(dimension_semantics=None):
    kwargs = {}
    if dimension_semantics:
        kwargs["dimension_semantics"] = tuple(dimension_semantics)
    try:
        cap = int(pltpu.get_tpu_info().vmem_capacity_bytes)
        # ~75% of physical VMEM (<=48 MiB on v7x, ~96 MiB on v5e/v6e), capped.
        kwargs["vmem_limit_bytes"] = max(32 << 20, min((cap * 3) // 4, 100 << 20))
    except Exception:
        pass  # fall back to the compiler default
    return pltpu.CompilerParams(**kwargs)


def _full_spec(shape):
    # single-block spec: block == full array, explicitly VMEM-resident
    return pl.BlockSpec(shape, lambda *_: (0,) * len(shape),
                        memory_space=pltpu.MemorySpace.VMEM)


def _pad2(a, rows, cols):
    pr, pc = rows - a.shape[0], cols - a.shape[1]
    return jnp.pad(a, ((0, pr), (0, pc)))


# ----------------------------------------------------------------------------
# Kernel 1: one GCN layer,  out = relu?((A_hat @ X) @ W + b)
#   grid = (row tiles of A, col tiles of A);  bf16 MXU inputs, f32 accumulation
# ----------------------------------------------------------------------------
def gcn_kernel(a_ref, x_ref, w_ref, b_ref, out_ref, acc_ref, *, apply_relu):
    k = pl.program_id(1)

    @pl.when(k == 0)
    def _():
        acc_ref[...] = jnp.zeros_like(acc_ref)

    # Accumulate (A @ X) over adjacency column tiles. A tile arrives as bf16;
    # the node-feature tile is cast to bf16 at point of use (f32 accumulation).
    acc_ref[...] += jnp.dot(a_ref[...], x_ref[...].astype(jnp.bfloat16),
                            preferred_element_type=jnp.float32)

    @pl.when(k == pl.num_programs(1) - 1)
    def _():
        h = jnp.dot(acc_ref[...], w_ref[...],
                    preferred_element_type=jnp.float32) + b_ref[...]
        if apply_relu:
            h = jnp.maximum(h, 0.0)
        out_ref[...] = h.astype(out_ref.dtype)


def gcn_layer(a_bf16, x, w, b, *, apply_relu, tm=128, tk=128):
    """a_bf16: [N, N] bf16, x: [N, Fin] f32 (Fin lane-padded), w: [Fin, Fout],
    b: [1, Fout].  Returns relu?(A @ X @ W + b) as [N, Fout] f32."""
    n = a_bf16.shape[0]
    fin, fout = w.shape
    assert n % tm == 0 and n % tk == 0

    kernel = functools.partial(gcn_kernel, apply_relu=apply_relu)
    return pl.pallas_call(
        kernel,
        out_shape=jax.ShapeDtypeStruct((n, fout), jnp.float32),
        grid_spec=pltpu.PrefetchScalarGridSpec(
            num_scalar_prefetch=0,
            grid=(n // tm, n // tk),
            in_specs=[
                pl.BlockSpec((tm, tk), lambda i, k: (i, k)),     # A_hat tile
                pl.BlockSpec((tk, fin), lambda i, k: (k, 0)),    # X rows for this k
                pl.BlockSpec((fin, fout), lambda i, k: (0, 0)),  # W (resident)
                pl.BlockSpec((1, fout), lambda i, k: (0, 0)),    # b (resident)
            ],
            out_specs=pl.BlockSpec((tm, fout), lambda i, k: (i, 0)),
            scratch_shapes=[pltpu.VMEM((tm, fout), jnp.float32)],
        ),
        compiler_params=_compiler_params(("parallel", "arbitrary")),
    )(a_bf16, x, w, b)


# ----------------------------------------------------------------------------
# Kernel 2: global_add_pool -> fc -> decoder -> broadcast back to nodes
#   (small single-block kernel; the O(N^2) work lives in gcn_layer above)
# ----------------------------------------------------------------------------
def pool_fc_decode_kernel(p_ref, h2_ref, wfc_ref, bfc_ref, wdec_ref, bdec_ref,
                          latent_ref, zn_ref):
    f32 = jnp.float32
    p = p_ref[...]                                                  # [Gp, N]

    pooled = jnp.dot(p, h2_ref[...], preferred_element_type=f32)    # [Gp, Hp]
    lat = jnp.dot(pooled, wfc_ref[...], preferred_element_type=f32) + bfc_ref[...]
    lat = jnp.maximum(lat, 0.0)                                     # [Gp, Lp]
    latent_ref[...] = lat

    z = jnp.dot(lat, wdec_ref[...], preferred_element_type=f32) + bdec_ref[...]
    z = jnp.maximum(z, 0.0)                                         # [Gp, Hp]

    # z[batch]  ==  P^T @ z, expressed as a contraction over the graph axis
    # (no transpose materialized in VMEM).
    zn_ref[...] = lax.dot_general(p, z,
                                  dimension_numbers=(((0,), (0,)), ((), ())),
                                  preferred_element_type=f32)        # [N, Hp]


def pool_fc_decode(pool, h2, wfc, bfc, wdec, bdec):
    gp, n = pool.shape
    lp = wfc.shape[1]
    hp = wdec.shape[1]
    args = (pool, h2, wfc, bfc, wdec, bdec)
    return pl.pallas_call(
        pool_fc_decode_kernel,
        out_shape=(jax.ShapeDtypeStruct((gp, lp), jnp.float32),
                   jax.ShapeDtypeStruct((n, hp), jnp.float32)),
        in_specs=[_full_spec(a.shape) for a in args],
        out_specs=(_full_spec((gp, lp)), _full_spec((n, hp))),
        compiler_params=_compiler_params(),
    )(*args)


# ----------------------------------------------------------------------------
# Forward pass (pads feature dims to 128 lanes, casts A_hat to bf16)
# ----------------------------------------------------------------------------
def graph_autoencoder_forward(x, a_hat, pool, params, *, tile=128):
    """x: [N, F] f32, a_hat: [N, N] f32, pool: [Gp, N] f32 one-hot."""
    n, f = x.shape
    l = params["wfc"].shape[1]
    assert n % tile == 0, "pad the node count to a multiple of the tile size"

    a_bf16 = a_hat.astype(jnp.bfloat16)
    x_p = _pad2(x, n, LANE)
    w1_p, b1_p = _pad2(params["w1"], LANE, LANE), _pad2(params["b1"], 1, LANE)
    w2_p, b2_p = _pad2(params["w2"], LANE, LANE), _pad2(params["b2"], 1, LANE)
    wfc_p, bfc_p = _pad2(params["wfc"], LANE, LANE), _pad2(params["bfc"], 1, LANE)
    wdec_p, bdec_p = _pad2(params["wdec"], LANE, LANE), _pad2(params["bdec"], 1, LANE)
    w3_p, b3_p = _pad2(params["w3"], LANE, LANE), _pad2(params["b3"], 1, LANE)

    # conv1, conv2 (with ReLU)
    h1 = gcn_layer(a_bf16, x_p, w1_p, b1_p, apply_relu=True, tm=tile, tk=tile)
    h2 = gcn_layer(a_bf16, h1, w2_p, b2_p, apply_relu=True, tm=tile, tk=tile)

    # pool -> fc -> decoder -> z[batch]
    # TODO(synk): for very large N this single-block kernel would also get a
    # node-tile grid; the dominant O(N^2) adjacency work above is already tiled.
    latent_p, zn = pool_fc_decode(pool, h2, wfc_p, bfc_p, wdec_p, bdec_p)

    # conv3 (no ReLU):  A @ (zn @ W3) + b3  ==  (A @ zn) @ W3 + b3
    recon_p = gcn_layer(a_bf16, zn, w3_p, b3_p, apply_relu=False, tm=tile, tk=tile)

    return recon_p[:, :f], latent_p[:, :l]


# ----------------------------------------------------------------------------
# Plain-JAX glue: normalized adjacency, pooling matrix, parameters, reference
# ----------------------------------------------------------------------------
def build_a_hat(edge_index, num_nodes):
    """PyG GCNConv normalization: add self-loops, D^-1/2 (A+I) D^-1/2."""
    row, col = edge_index[0], edge_index[1]
    loops = jnp.arange(num_nodes, dtype=row.dtype)
    row = jnp.concatenate([row, loops])
    col = jnp.concatenate([col, loops])
    deg = jnp.zeros((num_nodes,), jnp.float32).at[col].add(1.0)
    dinv = jnp.where(deg > 0, lax.rsqrt(deg), 0.0)
    vals = dinv[col] * dinv[row]
    a_hat = jnp.zeros((num_nodes, num_nodes), jnp.float32).at[col, row].add(vals)
    return a_hat


def build_pool_matrix(batch, num_nodes, num_graphs_padded):
    p = jnp.zeros((num_graphs_padded, num_nodes), jnp.float32)
    return p.at[batch, jnp.arange(num_nodes)].set(1.0)


def init_params(key, node_feat_size, hidden_channels, latent_size):
    ks = jax.random.split(key, 10)

    def w(k, i, o):
        return (jax.random.normal(k, (i, o), jnp.float32) / jnp.sqrt(i)).astype(jnp.float32)

    return {
        "w1": w(ks[0], node_feat_size, hidden_channels),
        "b1": jax.random.normal(ks[1], (1, hidden_channels), jnp.float32) * 0.01,
        "w2": w(ks[2], hidden_channels, hidden_channels),
        "b2": jax.random.normal(ks[3], (1, hidden_channels), jnp.float32) * 0.01,
        "wfc": w(ks[4], hidden_channels, latent_size),
        "bfc": jax.random.normal(ks[5], (1, latent_size), jnp.float32) * 0.01,
        "wdec": w(ks[6], latent_size, hidden_channels),
        "bdec": jax.random.normal(ks[7], (1, hidden_channels), jnp.float32) * 0.01,
        "w3": w(ks[8], hidden_channels, node_feat_size),
        "b3": jax.random.normal(ks[9], (1, node_feat_size), jnp.float32) * 0.01,
    }


def reference_forward(x, a_hat, p, params):
    relu = lambda t: jnp.maximum(t, 0.0)
    h = relu(a_hat @ (x @ params["w1"]) + params["b1"])
    h = relu(a_hat @ (h @ params["w2"]) + params["b2"])
    pooled = p @ h
    lat = relu(pooled @ params["wfc"] + params["bfc"])
    z = relu(lat @ params["wdec"] + params["bdec"])
    zn = p.T @ z
    recon = a_hat @ (zn @ params["w3"]) + params["b3"]
    return recon, lat


# ----------------------------------------------------------------------------
if __name__ == "__main__":
    key = jax.random.PRNGKey(0)

    NODE_FEAT = 8
    HIDDEN = 32
    LATENT = 16
    NODES_PER_GRAPH = 32
    NUM_GRAPHS = 8               # Gp = 8 (multiple of 8 sublanes)
    N = NODES_PER_GRAPH * NUM_GRAPHS   # 256 -> 2x2 grid of 128x128 A tiles
    G_PAD = NUM_GRAPHS

    kx, kp = jax.random.split(key)
    x = jax.random.normal(kx, (N, NODE_FEAT), jnp.float32)

    # bidirectional ring edges inside each graph
    src, dst = [], []
    for g in range(NUM_GRAPHS):
        base = g * NODES_PER_GRAPH
        for i in range(NODES_PER_GRAPH):
            a_node = base + i
            b_node = base + (i + 1) % NODES_PER_GRAPH
            src += [a_node, b_node]
            dst += [b_node, a_node]
    edge_index = jnp.array([src, dst], dtype=jnp.int32)   # [2, E]
    batch = jnp.repeat(jnp.arange(NUM_GRAPHS, dtype=jnp.int32), NODES_PER_GRAPH)

    a_hat = build_a_hat(edge_index, N)
    pool = build_pool_matrix(batch, N, G_PAD)
    params = init_params(kp, NODE_FEAT, HIDDEN, LATENT)

    recon, latent_padded = graph_autoencoder_forward(x, a_hat, pool, params)
    recon = jax.block_until_ready(recon)
    latent = jax.block_until_ready(latent_padded)[:NUM_GRAPHS]

    # correctness check against the plain-JAX f32 reference (bf16 adjacency /
    # activation matmuls in the kernel => loosened, magnitude-relative tolerance)
    ref_recon, ref_latent = reference_forward(x, a_hat, pool, params)

    def rel_err(a, b):
        scale = jnp.maximum(jnp.max(jnp.abs(b)), 1.0)
        return float(jnp.max(jnp.abs(a - b)) / scale)

    assert recon.shape == (N, NODE_FEAT)
    assert latent.shape == (NUM_GRAPHS, LATENT)
    assert rel_err(recon, ref_recon) < 5e-2, rel_err(recon, ref_recon)
    assert rel_err(latent, ref_latent[:NUM_GRAPHS]) < 5e-2, rel_err(latent, ref_latent[:NUM_GRAPHS])

    print("KERNEL_OK")
</pallas_src>

<mosaic_0001>
module attributes {stable_mosaic.version = 11 : i64} {
  func.func @gcn_kernel(%arg0: i32, %arg1: i32, %arg2: memref<128x128xbf16, #tpu.memory_space<vmem>>, %arg3: memref<128x128xf32, #tpu.memory_space<vmem>>, %arg4: memref<128x128xf32, #tpu.memory_space<vmem>>, %arg5: memref<1x128xf32, #tpu.memory_space<vmem>>, %arg6: memref<128x128xf32, #tpu.memory_space<vmem>>, %arg7: memref<128x128xf32, #tpu.memory_space<vmem>>) attributes {dimension_semantics = [#tpu.dimension_semantics<parallel>, #tpu.dimension_semantics<arbitrary>], iteration_bounds = array<i64: 2, 2>, scalar_prefetch = 0 : i64, scratch_operands = 1 : i64, tpu.core_type = #tpu.core_type<tc>, window_params = [{transform_indices = @transform_0, window_bounds = array<i64: 128, 128>}, {transform_indices = @transform_1, window_bounds = array<i64: 128, 128>}, {pipeline_mode = #tpu.pipeline_mode<synchronous>, transform_indices = @transform_2, window_bounds = array<i64: 128, 128>}, {pipeline_mode = #tpu.pipeline_mode<synchronous>, transform_indices = @transform_3, window_bounds = array<i64: 1, 128>}, {transform_indices = @transform_4, window_bounds = array<i64: 128, 128>}]} {
    %c0_i32 = arith.constant 0 : i32
    %0 = arith.cmpi eq, %arg1, %c0_i32 : i32
    %1 = arith.extui %0 : i1 to i32
    %c0_i32_0 = arith.constant 0 : i32
    %2 = arith.cmpi ne, %1, %c0_i32_0 : i32
    scf.if %2 {
      %cst_9 = arith.constant 0.000000e+00 : f32
      %13 = vector.broadcast %cst_9 : f32 to vector<128x128xf32>
      %c0_10 = arith.constant 0 : index
      %c0_11 = arith.constant 0 : index
      %14 = vector.load %arg7[%c0_10, %c0_11] : memref<128x128xf32, #tpu.memory_space<vmem>>, vector<128x128xf32>
      tpu.vector_store %arg7[%c0_10, %c0_11], %13 {strides = array<i32>} : memref<128x128xf32, #tpu.memory_space<vmem>>, vector<128x128xf32>,
    } else {
    }
    %c0 = arith.constant 0 : index
    %c0_1 = arith.constant 0 : index
    %3 = vector.load %arg7[%c0, %c0_1] : memref<128x128xf32, #tpu.memory_space<vmem>>, vector<128x128xf32>
    %c0_2 = arith.constant 0 : index
    %c0_3 = arith.constant 0 : index
    %4 = vector.load %arg2[%c0_2, %c0_3] : memref<128x128xbf16, #tpu.memory_space<vmem>>, vector<128x128xbf16>
    %c0_4 = arith.constant 0 : index
    %c0_5 = arith.constant 0 : index
    %5 = vector.load %arg3[%c0_4, %c0_5] : memref<128x128xf32, #tpu.memory_space<vmem>>, vector<128x128xf32>
    %6 = arith.truncf %5 : vector<128x128xf32> to vector<128x128xbf16>
    %cst = arith.constant dense<0.000000e+00> : vector<128x128xf32>
    %7 = tpu.matmul %4, %6, %cst {dimension_numbers = #tpu.dot_dimension_numbers<[1], [0], [0], [1], [0, 0, 1, 1], [], []>} : vector<128x128xbf16>, vector<128x128xbf16>, vector<128x128xf32> -> vector<128x128xf32>
    %8 = arith.addf %3, %7 : vector<128x128xf32>
    %c0_6 = arith.constant 0 : index
    %c0_7 = arith.constant 0 : index
    %9 = vector.load %arg7[%c0_6, %c0_7] : memref<128x128xf32, #tpu.memory_space<vmem>>, vector<128x128xf32>
    tpu.vector_store %arg7[%c0_6, %c0_7], %8 {strides = array<i32>} : memref<128x128xf32, #tpu.memory_space<vmem>>, vector<128x128xf32>,
    %c1_i32 = arith.constant 1 : i32
    %10 = arith.cmpi eq, %arg1, %c1_i32 : i32
    %11 = arith.extui %10 : i1 to i32
    %c0_i32_8 = arith.constant 0 : i32
    %12 = arith.cmpi ne, %11, %c0_i32_8 : i32
    scf.if %12 {
      %c0_9 = arith.constant 0 : index
      %c0_10 = arith.constant 0 : index
      %13 = vector.load %arg7[%c0_9, %c0_10] : memref<128x128xf32, #tpu.memory_space<vmem>>, vector<128x128xf32>
      %c0_11 = arith.constant 0 : index
      %c0_12 = arith.constant 0 : index
      %14 = vector.load %arg4[%c0_11, %c0_12] : memref<128x128xf32, #tpu.memory_space<vmem>>, vector<128x128xf32>
      %cst_13 = arith.constant dense<0.000000e+00> : vector<128x128xf32>
      %15 = tpu.matmul %13, %14, %cst_13 {dimension_numbers = #tpu.dot_dimension_numbers<[1], [0], [0], [1], [0, 0, 1, 1], [], []>} : vector<128x128xf32>, vector<128x128xf32>, vector<128x128xf32> -> vector<128x128xf32>
      %c0_14 = arith.constant 0 : index
      %c0_15 = arith.constant 0 : index
      %16 = vector.load %arg5[%c0_14, %c0_15] : memref<1x128xf32, #tpu.memory_space<vmem>>, vector<1x128xf32>
      %17 = vector.broadcast %16 : vector<1x128xf32> to vector<128x128xf32>
      %18 = arith.addf %15, %17 : vector<128x128xf32>
      %cst_16 = arith.constant 0.000000e+00 : f32
      %19 = vector.broadcast %cst_16 : f32 to vector<128x128xf32>
      %20 = arith.maximumf %18, %19 : vector<128x128xf32>
      %c0_17 = arith.constant 0 : index
      %c0_18 = arith.constant 0 : index
      %21 = vector.load %arg6[%c0_17, %c0_18] : memref<128x128xf32, #tpu.memory_space<vmem>>, vector<128x128xf32>
      tpu.vector_store %arg6[%c0_17, %c0_18], %20 {strides = array<i32>} : memref<128x128xf32, #tpu.memory_space<vmem>>, vector<128x128xf32>,
    } else {
    }
    return
  }
  func.func @transform_0(%arg0: i32, %arg1: i32) -> (i32, i32) {
    %c0_i32 = arith.constant 0 : i32
    return %arg0, %arg1 : i32, i32
  }
  func.func @transform_1(%arg0: i32, %arg1: i32) -> (i32, i32) {
    %c0_i32 = arith.constant 0 : i32
    %c0_i32_0 = arith.constant 0 : i32
    return %arg1, %c0_i32 : i32, i32
  }
  func.func @transform_2(%arg0: i32, %arg1: i32) -> (i32, i32) {
    %c0_i32 = arith.constant 0 : i32
    %c0_i32_0 = arith.constant 0 : i32
    %c0_i32_1 = arith.constant 0 : i32
    return %c0_i32, %c0_i32_0 : i32, i32
  }
  func.func @transform_3(%arg0: i32, %arg1: i32) -> (i32, i32) {
    %c0_i32 = arith.constant 0 : i32
    %c0_i32_0 = arith.constant 0 : i32
    %c0_i32_1 = arith.constant 0 : i32
    return %c0_i32, %c0_i32_0 : i32, i32
  }
  func.func @transform_4(%arg0: i32, %arg1: i32) -> (i32, i32) {
    %c0_i32 = arith.constant 0 : i32
    %c0_i32_0 = arith.constant 0 : i32
    return %arg0, %c0_i32 : i32, i32
  }
}

</mosaic_0001>

<bundles_post_ra>
// kernel: tpu_custom_call.1
= control target key start
LH: loop header
LB: loop body
LE: loop exit
PB: predicated region body
PF: predicated region fallthrough
CT: control target
= control target key end

     0   :  { %s1658_s0 = inlined_call_operand.hbm [shape: bf16[256,256], index: 0, kind: input, shape index: {}]   ;;  %s1659_s1 = inlined_call_operand.hbm [shape: f32[256,128], index: 1, kind: input, shape index: {}]   ;;  %s1660_s2 = inlined_call_operand.hbm [shape: f32[128,128], index: 2, kind: input, shape index: {}]   ;;  %s1661_s3 = inlined_call_operand.vmem [shape: f32[1,128], index: 3, kind: input, shape index: {}]   ;;  %s1662_s4 = inlined_call_operand.hbm [shape: f32[256,128], index: 4, kind: output, shape index: {}]  }
   0x1   :  { %1676 = sst [smem:[#allocation25_spill]] %s1658_s0 }
   0x2   :  { %1677 = sst [smem:[#allocation26_spill]] %s1660_s2 }
   0x3   :  { %1678 = sst [smem:[#allocation27_spill]] %s1661_s3 }
   0x4   :  { %1679 = sst [smem:[#allocation28_spill]] %s1662_s4 }
   0x5   :  { %9 = vsyncpa [#allocation4], 0 }
   0x6   :  { %11 = vsyncpa [#allocation4 + $0x1], 0 }
   0x7   :  { %12 = vsyncpa [#allocation7], 0 }
   0x8   :  { %14 = vsyncpa [#allocation7 + $0x1], 0 }
   0x9   :  { %15 = vsyncpa [#allocation5], 0 }
   0xa   :  { %17 = vsyncpa [#allocation5 + $0x1], 0  ;;  %s1339_s15 = smov 0   ;;  %s1341_s16 = smov 0  }
   0xb   :  { %s1343_s17 = smov 0   ;;  %s1345_s18 = smov 0  }
   0xc   :  { %s1347_s19 = smov 0   ;;  %s1349_s20 = smov 0  }
   0xd   :  { %s1351_s21 = smov 0   ;;  %s1353_s22 = smov 0  }
   0xe   :  { %s1355_s23 = smov 0   ;;  %s1357_s24 = smov 0  }
   0xf   :  { %s1359_s25 = smov 0   ;;  %s1361_s26 = smov 0  }
  0x10   :  { %s1363_s27 = smov 0   ;;  %s1365_s28 = smov 0  }
  0x11 LB: > { %1680 = sst [smem:[#allocation14_spill]] %s1252_s15  ;;  %s1406_s29 = sadd.s32 4294967295, %s1304_s28   ;;  %s1304_s28 = sphi %s1365_s28, %s23_s28   ;;  %s1300_s27 = sphi %s1363_s27, %s1725_s27   ;;  %s1296_s26 = sphi %s1361_s26, %s1724_s26   ;;  %s1292_s25 = sphi %s1359_s25, %s1713_s25   ;;  %s1288_s24 = sphi %s1357_s24, %s1723_s24   ;;  %s1284_s23 = sphi %s1355_s23, %s1712_s23   ;;  %s1280_s22 = sphi %s1353_s22, %s1722_s22   ;;  %s1276_s21 = sphi %s1351_s21, %s1721_s21   ;;  %s1272_s20 = sphi %s1349_s20, %s1720_s20   ;;  %s1268_s19 = sphi %s1347_s19, %s1719_s19   ;;  %s1264_s18 = sphi %s1345_s18, %s1718_s18   ;;  %s1260_s17 = sphi %s1343_s17, %s1710_s17   ;;  %s1256_s16 = sphi %s1341_s16, %s1717_s16   ;;  %s1252_s15 = sphi %s1339_s15, %s1716_s15  }
  0x12   : > { %1681 = sst [smem:[#allocation15_spill]] %s1260_s17  ;;  %s772_s30 = sadd.s32 4294967294, %s1304_s28  }
  0x13   : > { %1682 = sst [smem:[#allocation16_spill]] %s1284_s23  ;;  %p57_p0 = scmp.ne.s32.totalorder %s1280_s22, %s1276_s21 }
  0x14   : > { %1683 = sst [smem:[#allocation17_spill]] %s1292_s25  ;;  %p58_p1 = scmp.eq.s32.totalorder %s1406_s29, 0 }
  0x15   : > { %1684 = sst [smem:[#allocation18_spill]] %s1300_s27  ;;  %p83_p2 = scmp.ne.s32.totalorder %s1268_s19, %s1264_s18 }
  0x16   : > { %p148_p3 = scmp.ne.s32.totalorder %s1260_s17, %s1256_s16  ;;  %p1416_p4 = por %p58_p1, %p57_p0 }
  0x17   : > { %p149_p5 = scmp.eq.s32.totalorder %s1406_s29, 3  ;;  %p1423_p6 = por %p83_p2, %p58_p1 }
  0x18   : > { %p154_p7 = scmp.ne.s32.totalorder %s1256_s16, %s1252_s15  ;;  %p155_p9 = scmp.eq.s32.totalorder %s772_s30, 3 }
  0x19   : > { %p1429_p8 = por %p149_p5, %p148_p3  ;;  %p773_p10 = scmp.ge.s32.totalorder %s1304_s28, 1 }
  0x1a   : > { %p162_p11 = scmp.lt.s32.totalorder %s1304_s28, 5  ;;  %p1435_p12 = por %p155_p9, %p154_p7 }
  0x1b   : > { %s1687_s7 = scalar_select %p1429_p8, 1, 0 }
  0x1c   : > { %s1689_s8 = scalar_select %p1435_p12, 1, 0 }
  0x1d   : > { %1688 = sst [smem:[#allocation19_spill]] %s1687_s7  ;;  %p1439_p13 = pnand %p773_p10, %p162_p11 }
  0x1e   : > { %1690 = sst [smem:[#allocation20_spill]] %s1689_s8  ;;  %s1306_s13 = smov [#allocation8]  }
  0x1f   : > { %s1692_s2 = sld [smem:[#allocation26_spill]]  ;;  %p920_p0 = pneg %p1439_p13 }
  0x20   : > { %s175_s14 = sshll.u32 %s1306_s13, 4  ;;  %s1664_s18 = smov 128   ;;  %s176_s14 = int_to_ptr.vmem [resolvable:$true] %s175_s14 }
  0x21   : > { %p921_p2 = pnand %p920_p0, %p58_p1  ;;  %s1663_s21 = smov 8  }
  0x22   : > { %s32_s30 = sadd.s32 1, %s1296_s26  ;;  %s35_s10 = sadd.s32 1, %s1300_s27 }
  0x23   : > { %p33_p3 = scmp.ge.s32.totalorder %s32_s30, 2  ;;  %s44_s11 = sadd.s32 1, %s1284_s23 }
  0x24   : > { %p51_p5 = scmp.ne.s32.totalorder %s1284_s23, %s1280_s22  ;;  %p52_p7 = scmp.eq.s32.totalorder %s1304_s28, 0 }
  0x25   : > { %s173_s12 = sshll.u32 %s1692_s2, 4  ;;  %s1727_s30 = smov (%p33_p3, %s32_s30), 0  ;;  %s174_s12 = int_to_ptr.hbm [resolvable:$true] %s173_s12 }
  0x26   : > { %923 = dma.hbm_to_vmem [thread:$0]  (!%p921_p2), %s174_s12, 2048, %s176_s14, [#allocation7], %s1664_s18, %s1664_s18, %s1663_s21  }
  0x27   : > { %1693 = sst [smem:[#allocation21_spill]] %s1727_s30  ;;  %s1729_s10 = smov (!%p33_p3, %s35_s10), %s1300_s27 }
  0x28   : > { %s1464_s13 = ssub.s32 %s1296_s26, %s1727_s30  ;;  %p1468_p9 = por %p52_p7, %p51_p5 }
  0x29   : > { %p37_p10 = scmp.ge.s32.totalorder %s1729_s10, 2  ;;  %p68_p11 = scmp.eq.s32.totalorder %s1464_s13, 0 }
  0x2a   : > { %s138_s14 = sadd.s32 1, %s1260_s17  ;;  %p936_p0 = scmp.lt.s32.totalorder %s1304_s28, 4 }
  0x2b   : > { %s1731_s10 = smov (%p37_p10, %s1729_s10), 0  ;;  %s192_s21 = sand.u32 1, %s1284_s23  }
  0x2c   : > { %1695 = sst [smem:[#allocation22_spill]] %s1731_s10  ;;  %s827_s18 = sshll.u32 %s1300_s27, 5 }
  0x2d   : > { %s39_s2 = ssub.s32 %s1300_s27, %s1731_s10  ;;  %s776_s8 = sshll.u32 %s192_s21, 6 }
  0x2e   : > { %s41_s30 = sor.u32 %s1464_s13, %s39_s2  ;;  %p136_p2 = scmp.eq.s32.totalorder %s39_s2, 0 }
  0x2f   : > { %p42_p3 = scmp.eq.s32.totalorder %s41_s30, 0  ;;  %s201_s7 = sadd.s32 %s1296_s26, %s827_s18 }
  0x30   : > { %s1483_s15 = scalar_select %p136_p2, %s1260_s17, %s138_s14  }
  0x31   : > { %s1486_s4 = scalar_select %p42_p3, %s1284_s23, %s44_s11  }
  0x32   : > { %1696 = sst [smem:[#allocation23_spill]] %s1483_s15  ;;  %s779_s25 = sshll.u32 %s201_s7, 2 }
  0x33   : > { %1697 = sst [smem:[#allocation24_spill]] %s1486_s4  ;;  %s196_s3 = scalar_lea.vmem [#allocation3], %s776_s8 }
  0x34   : > { %s206_s10 = sshll.u32 %s196_s3, 4  ;;  %s1698_s0 = sld [smem:[#allocation25_spill]]  ;;  %s207_s10 = int_to_ptr.vmem [resolvable:$true] %s206_s10 }
  0x35   : > { %p925_p5 = pnand %p936_p0, %p1468_p9  ;;  %s193_s11 = scalar_lea.sflag [#allocation4], %s192_s21 }
  0x36   : > { %s1309_s18 = smov 64   ;;  %s1310_s4 = smov 4  }
  0x37   : > { %s1699_s23 = smov 128   ;;  %s216_s7 = sand.u32 1, %s1304_s28  }
  0x38   : > { %s70_s8 = sadd.s32 1, %s1272_s20  ;;  %p77_p10 = scmp.ne.s32.totalorder %s1272_s20, %s1268_s19 }
  0x39   : > { %s1504_s3 = scalar_select %p68_p11, %s1272_s20, %s70_s8  }
  0x3a   : > { %s203_s30 = scalar_lea.hbm %s1698_s0, %s779_s25  ;;  %p79_p2 = por %p77_p10, %p52_p7 }
  0x3b   : > { %s204_s14 = sshll.u32 %s203_s30, 4  ;;  %s218_s25 = sand.u32 1, %s1272_s20   ;;  %s205_s14 = int_to_ptr.hbm [resolvable:$true] %s204_s14 }
  0x3c   : > { %927 = dma.hbm_to_vmem [thread:$0]  (!%p925_p5), %s205_s14, 1024, %s207_s10, %s193_s11, %s1699_s23, %s1309_s18, %s1310_s4  }
  0x3d   : > { %s780_s27 = sshll.u32 %s218_s25, 7  ;;  %s828_s12 = sshll.u32 %s1296_s26, 7 }
  0x3e   : > { %s225_s21 = scalar_lea.hbm %s1659_s1, %s828_s12  ;;  %s220_s15 = scalar_lea.vmem [#allocation6], %s780_s27 }
  0x3f   : > { %s226_s0 = sshll.u32 %s225_s21, 4  ;;  %s228_s17 = sshll.u32 %s220_s15, 4  ;;  %s227_s0 = int_to_ptr.hbm [resolvable:$true] %s226_s0  ;;  %s229_s17 = int_to_ptr.vmem [resolvable:$true] %s228_s17 }
  0x40   : > { %p928_p9 = pnand %p936_p0, %p79_p2  ;;  %s217_s4 = scalar_lea.sflag [#allocation7], %s216_s7 }
  0x41   : > { %s1700_s10 = smov 8   ;;  %240 = sbr.rel (%p1439_p13) target bundleno = 512 (0x200), region = 36 }
  0x42   : > { %930 = dma.hbm_to_vmem [thread:$0]  (!%p928_p9), %s227_s0, 2048, %s229_s17, %s217_s4, %s1699_s23, %s1699_s23, %s1700_s10  }
  0x43   : > { %s242_s13 = sand.u32 (!%p1439_p13), 1, %s1280_s22  }
  0x44   : > { %s784_s14 = sshll.u32 (!%p1439_p13), %s242_s13, 6  ;;  %s243_s11 = scalar_lea.sflag (!%p1439_p13), [#allocation4], %s242_s13 }
  0x45   : > { %s1521_s18 = scalar_lea.vmem (!%p1439_p13), [#allocation3], %s784_s14 }
  0x46   : > { %1235 = dma.done.wait (%p1416_p4), %s243_s11, 1024  }
  0x47   : > { %1237 = vsyncadd (%p1416_p4), %s243_s11, 4294966272  ;;  %s252_s15 = sand.u32 1, %s1406_s29   ;;  %s254_s0 = sand.u32 1, %s1268_s19  }
  0x48   : > { %s785_s17 = sshll.u32 %s254_s0, 7  ;;  %s253_s23 = scalar_lea.sflag [#allocation7], %s252_s15 }
  0x49   : > { %s1529_s9 = scalar_lea.vmem [#allocation6], %s785_s17 }
  0x4a   : > { %1239 = dma.done.wait (%p1423_p6), %s253_s23, 2048  }
  0x4b   : > { %1241 = vsyncadd (%p1423_p6), %s253_s23, 4294965248 }
  0x4c   : > { %1243 = dma.done.wait (%p58_p1), [#allocation7], 2048  }
  0x4d   : > { %1245 = vsyncadd (%p58_p1), [#allocation7], 4294965248  ;;  %s289_s5 = sand.u32 1, %s1256_s16   ;;  %p788_p4 = scmp.ne.s32.totalorder %s1288_s24, 0 }
  0x4e   : > { %s787_s7 = sshll.u32 %s289_s5, 7 }
  0x4f   : > { %s1542_s8 = scalar_lea.vmem [#allocation9], %s787_s7  ;;  %298 = sbr.rel (%p788_p4) target bundleno = 101 (0x65), region = 52 }
  0x54   : > { %v1311_v0 = vmov 0.0  }
  0x55   : > { %299 = vst [vmem:[#allocation2 + $0x30] sm:$0xff] %v1311_v0 }
  0x56   : > { %300 = vst [vmem:[#allocation2] sm:$0xff] %v1311_v0 }
  0x57   : > { %301 = vst [vmem:[#allocation2 + $0x58] sm:$0xff] %v1311_v0 }
  0x58   : > { %302 = vst [vmem:[#allocation2 + $0x18] sm:$0xff] %v1311_v0 }
  0x59   : > { %303 = vst [vmem:[#allocation2 + $0x50] sm:$0xff] %v1311_v0 }
  0x5a   : > { %304 = vst [vmem:[#allocation2 + $0x68] sm:$0xff] %v1311_v0 }
  0x5b   : > { %305 = vst [vmem:[#allocation2 + $0x8] sm:$0xff] %v1311_v0 }
  0x5c   : > { %306 = vst [vmem:[#allocation2 + $0x48] sm:$0xff] %v1311_v0 }
  0x5d   : > { %307 = vst [vmem:[#allocation2 + $0x40] sm:$0xff] %v1311_v0 }
  0x5e   : > { %308 = vst [vmem:[#allocation2 + $0x20] sm:$0xff] %v1311_v0 }
  0x5f   : > { %309 = vst [vmem:[#allocation2 + $0x10] sm:$0xff] %v1311_v0 }
  0x60   : > { %310 = vst [vmem:[#allocation2 + $0x38] sm:$0xff] %v1311_v0 }
  0x61   : > { %311 = vst [vmem:[#allocation2 + $0x60] sm:$0xff] %v1311_v0 }
  0x62   : > { %312 = vst [vmem:[#allocation2 + $0x70] sm:$0xff] %v1311_v0 }
  0x63   : > { %313 = vst [vmem:[#allocation2 + $0x78] sm:$0xff] %v1311_v0 }
  0x64   : > { %314 = vst [vmem:[#allocation2 + $0x28] sm:$0xff] %v1311_v0 }
  0x65 PF: > { %v361_v1 = vld [vmem:[%s1529_s9 + $0x70] sm:$0xff]  ;;  %v362_v2 = vld [vmem:[%s1529_s9 + $0x78] sm:$0xff]  ;;  %v359_v3 = vld [vmem:[%s1529_s9 + $0x60] sm:$0xff]  ;;  %p821_p1 = scmp.ne.s32.totalorder %s1288_s24, 1 }
  0x66   : > { %v370_v4 = vpack.c.bf16 %v362_v2, %v361_v1  ;;  %v360_v5 = vld [vmem:[%s1529_s9 + $0x68] sm:$0xff]  ;;  %v357_v7 = vld [vmem:[%s1529_s9 + $0x50] sm:$0xff]  ;;  %v358_v8 = vld [vmem:[%s1529_s9 + $0x58] sm:$0xff]  ;;  %s1701_s6 = sld [smem:[#allocation27_spill]] (!%p821_p1) }
  0x67   : > { %v369_v6 = vpack.c.bf16 %v360_v5, %v359_v3  ;;  %v368_v9 = vpack.c.bf16 %v358_v8, %v357_v7  ;;  %v355_v10 = vld [vmem:[%s1529_s9 + $0x40] sm:$0xff]  ;;  %v356_v11 = vld [vmem:[%s1529_s9 + $0x48] sm:$0xff]  ;;  %v353_v13 = vld [vmem:[%s1529_s9 + $0x30] sm:$0xff] }
  0x68   : > { %419 = vmatpush.bf16.msra.mxu0 %v370_v4  ;;  %838 = vmatpush.bf16.msra.mxu1 %v370_v4  ;;  %v367_v12 = vpack.c.bf16 %v356_v11, %v355_v10  ;;  %v354_v14 = vld [vmem:[%s1529_s9 + $0x38] sm:$0xff]  ;;  %v351_v16 = vld [vmem:[%s1529_s9 + $0x20] sm:$0xff]  ;;  %v352_v17 = vld [vmem:[%s1529_s9 + $0x28] sm:$0xff] }
  0x69   : > { %839 = vmatpush.bf16.msra.mxu2 %v370_v4  ;;  %840 = vmatpush.bf16.msra.mxu3 %v370_v4  ;;  %v366_v15 = vpack.c.bf16 %v354_v14, %v353_v13  ;;  %v365_v18 = vpack.c.bf16 %v352_v17, %v351_v16  ;;  %v349_v19 = vld [vmem:[%s1529_s9 + $0x10] sm:$0xff]  ;;  %v350_v20 = vld [vmem:[%s1529_s9 + $0x18] sm:$0xff]  ;;  %v347_v22 = vld [vmem:[%s1529_s9] sm:$0xff] }
  0x6a   : > { %v364_v21 = vpack.c.bf16 %v350_v20, %v349_v19  ;;  %v348_v23 = vld [vmem:[%s1529_s9 + $0x8] sm:$0xff]  ;;  %v829_v25 = vld [vmem:[%s1521_s18] sm:$0xff]  ;;  %v831_v26 = vld [vmem:[%s1521_s18 + $0x10] sm:$0xff] }
  0x6b   : > { %v363_v24 = vpack.c.bf16 %v348_v23, %v347_v22  ;;  %v833_v27 = vld [vmem:[%s1521_s18 + $0x20] sm:$0xff]  ;;  %v835_v28 = vld [vmem:[%s1521_s18 + $0x30] sm:$0xff]  ;;  %v830_v29 = vld [vmem:[%s1521_s18 + $0x8] sm:$0xff] }
  0x6c   : > { %420 = vmatpush.bf16.msra.mxu0 %v369_v6  ;;  %841 = vmatpush.bf16.msra.mxu1 %v369_v6  ;;  %v832_v30 = vld [vmem:[%s1521_s18 + $0x18] sm:$0xff]  ;;  %v834_v31 = vld [vmem:[%s1521_s18 + $0x28] sm:$0xff]  ;;  %v315_v33 = vld [vmem:[#allocation2 + $0x30] sm:$0xff] }
  0x6d   : > { %842 = vmatpush.bf16.msra.mxu2 %v369_v6  ;;  %843 = vmatpush.bf16.msra.mxu3 %v369_v6  ;;  %v836_v32 = vld [vmem:[%s1521_s18 + $0x38] sm:$0xff]  ;;  %v319_v34 = vld [vmem:[#allocation2 + $0x50] sm:$0xff]  ;;  %v323_v39 = vld [vmem:[#allocation2 + $0x40] sm:$0xff] }
  0x6e   : > { %v327_v40 = vld [vmem:[#allocation2 + $0x60] sm:$0xff]  ;;  %v320_v42 = vld [vmem:[#allocation2 + $0x68] sm:$0xff]  ;;  %v328_v52 = vld [vmem:[#allocation2 + $0x70] sm:$0xff] }
  0x6f   : > { %v316_v41 = vld [vmem:[#allocation2] sm:$0xff]  ;;  %v317_v53 = vld [vmem:[#allocation2 + $0x58] sm:$0xff]  ;;  %v321_v54 = vld [vmem:[#allocation2 + $0x8] sm:$0xff] }
  0x70   : > { %421 = vmatpush.bf16.msra.mxu0 %v368_v9  ;;  %844 = vmatpush.bf16.msra.mxu1 %v368_v9  ;;  %v324_v51 = vld [vmem:[#allocation2 + $0x20] sm:$0xff]  ;;  %v325_v63 = vld [vmem:[#allocation2 + $0x10] sm:$0xff]  ;;  %v329_v0 = vld [vmem:[#allocation2 + $0x78] sm:$0xff] }
  0x71   : > { %845 = vmatpush.bf16.msra.mxu2 %v368_v9  ;;  %846 = vmatpush.bf16.msra.mxu3 %v368_v9  ;;  %v318_v1 = vld [vmem:[#allocation2 + $0x18] sm:$0xff]  ;;  %v322_v2 = vld [vmem:[#allocation2 + $0x48] sm:$0xff] }
  0x72   : > { %v326_v11 = vld [vmem:[#allocation2 + $0x38] sm:$0xff] }
  0x74   : > { %422 = vmatpush.bf16.msra.mxu0 %v367_v12  ;;  %847 = vmatpush.bf16.msra.mxu1 %v367_v12 }
  0x75   : > { %848 = vmatpush.bf16.msra.mxu2 %v367_v12  ;;  %849 = vmatpush.bf16.msra.mxu3 %v367_v12  ;;  %v330_v12 = vld [vmem:[#allocation2 + $0x28] sm:$0xff] }
  0x78   : > { %423 = vmatpush.bf16.msra.mxu0 %v366_v15  ;;  %850 = vmatpush.bf16.msra.mxu1 %v366_v15 }
  0x79   : > { %851 = vmatpush.bf16.msra.mxu2 %v366_v15  ;;  %852 = vmatpush.bf16.msra.mxu3 %v366_v15 }
  0x7c   : > { %424 = vmatpush.bf16.msra.mxu0 %v365_v18  ;;  %853 = vmatpush.bf16.msra.mxu1 %v365_v18 }
  0x7d   : > { %854 = vmatpush.bf16.msra.mxu2 %v365_v18  ;;  %855 = vmatpush.bf16.msra.mxu3 %v365_v18 }
  0x80   : > { %425 = vmatpush.bf16.msra.mxu0 %v364_v21  ;;  %856 = vmatpush.bf16.msra.mxu1 %v364_v21 }
  0x81   : > { %857 = vmatpush.bf16.msra.mxu2 %v364_v21  ;;  %858 = vmatpush.bf16.msra.mxu3 %v364_v21 }
  0x84   : > { %426 = vmatpush.bf16.msra.mxu0 %v363_v24  ;;  %859 = vmatpush.bf16.msra.mxu1 %v363_v24 }
  0x85   : > { %860 = vmatpush.bf16.msra.mxu2 %v363_v24  ;;  %861 = vmatpush.bf16.msra.mxu3 %v363_v24 }
  0x87   : > { %427 = vmatmul.bf16.vlgmr.msra.gmra.mxu0 %v829_v25  ;;  %437 = vmatmul.bf16.vlgmr.msra.gmra.mxu1 %v831_v26 }
  0x88   : > { %447 = vmatmul.bf16.vlgmr.msra.gmra.mxu2 %v833_v27  ;;  %457 = vmatmul.bf16.vlgmr.msra.gmra.mxu3 %v835_v28 }
  0x97   : > { %432 = vmatmul.bf16.gmra.mxu0 %v830_v29  ;;  %442 = vmatmul.bf16.gmra.mxu1 %v832_v30 }
  0x98   : > { %452 = vmatmul.bf16.gmra.mxu2 %v834_v31  ;;  %462 = vmatmul.bf16.gmra.mxu3 %v836_v32 }
 0x104   : > { %v428_v35 = vpop.f32.mrf.mxu0  ;;  %v438_v36 = vpop.f32.mrf.mxu1 }
 0x105   : > { %v468_v37 = vadd.f32 %v428_v35, %v315_v33  ;;  %v472_v38 = vadd.f32 %v438_v36, %v319_v34 }
 0x107   : > { %484 = vst [vmem:[#allocation2 + $0x30] sm:$0xff] %v468_v37 }
 0x108   : > { %488 = vst [vmem:[#allocation2 + $0x50] sm:$0xff] %v472_v38 }
 0x10b   : > { %v448_v43 = vpop.f32.mrf.mxu2  ;;  %v458_v44 = vpop.f32.mrf.mxu3 }
 0x10c   : > { %v476_v45 = vadd.f32 %v448_v43, %v323_v39  ;;  %v480_v46 = vadd.f32 %v458_v44, %v327_v40  ;;  %v430_v47 = vpop.f32.mrf.mxu0  ;;  %v440_v48 = vpop.f32.mrf.mxu1 }
 0x10d   : > { %v469_v49 = vadd.f32 %v430_v47, %v316_v41  ;;  %v473_v50 = vadd.f32 %v440_v48, %v320_v42 }
 0x10e   : > { %492 = vst [vmem:[#allocation2 + $0x40] sm:$0xff] %v476_v45 }
 0x10f   : > { %496 = vst [vmem:[#allocation2 + $0x60] sm:$0xff] %v480_v46 }
 0x110   : > { %485 = vst [vmem:[#allocation2] sm:$0xff] %v469_v49 }
 0x111   : > { %489 = vst [vmem:[#allocation2 + $0x68] sm:$0xff] %v473_v50 }
 0x113   : > { %v450_v55 = vpop.f32.mrf.mxu2  ;;  %v460_v56 = vpop.f32.mrf.mxu3 }
 0x114   : > { %v477_v57 = vadd.f32 %v450_v55, %v324_v51  ;;  %v481_v58 = vadd.f32 %v460_v56, %v328_v52  ;;  %v433_v59 = vpop.f32.mrf.mxu0  ;;  %v443_v60 = vpop.f32.mrf.mxu1 }
 0x115   : > { %v470_v61 = vadd.f32 %v433_v59, %v317_v53  ;;  %v474_v62 = vadd.f32 %v443_v60, %v321_v54 }
 0x116   : > { %493 = vst [vmem:[#allocation2 + $0x20] sm:$0xff] %v477_v57 }
 0x117   : > { %497 = vst [vmem:[#allocation2 + $0x70] sm:$0xff] %v481_v58 }
 0x118   : > { %486 = vst [vmem:[#allocation2 + $0x58] sm:$0xff] %v470_v61 }
 0x119   : > { %490 = vst [vmem:[#allocation2 + $0x8] sm:$0xff] %v474_v62 }
 0x11b   : > { %v453_v3 = vpop.f32.mrf.mxu2  ;;  %v463_v4 = vpop.f32.mrf.mxu3 }
 0x11c   : > { %v478_v5 = vadd.f32 %v453_v3, %v325_v63  ;;  %v482_v6 = vadd.f32 %v463_v4, %v329_v0  ;;  %v435_v7 = vpop.f32.mrf.mxu0  ;;  %v445_v8 = vpop.f32.mrf.mxu1 }
 0x11d   : > { %v471_v9 = vadd.f32 %v435_v7, %v318_v1  ;;  %v475_v10 = vadd.f32 %v445_v8, %v322_v2 }
 0x11e   : > { %494 = vst [vmem:[#allocation2 + $0x10] sm:$0xff] %v478_v5 }
 0x11f   : > { %498 = vst [vmem:[#allocation2 + $0x78] sm:$0xff] %v482_v6 }
 0x120   : > { %487 = vst [vmem:[#allocation2 + $0x18] sm:$0xff] %v471_v9 }
 0x121   : > { %491 = vst [vmem:[#allocation2 + $0x48] sm:$0xff] %v475_v10 }
 0x123   : > { %v455_v13 = vpop.f32.mrf.mxu2  ;;  %v465_v14 = vpop.f32.mrf.mxu3  ;;  %503 = sbr.rel (%p821_p1) target bundleno = 490 (0x1ea), region = 56 }
 0x124   : > { %v479_v15 = vadd.f32 %v455_v13, %v326_v11  ;;  %v483_v16 = vadd.f32 %v465_v14, %v330_v12 }
 0x126   : > { %495 = vst [vmem:[#allocation2 + $0x38] sm:$0xff] %v479_v15 }
 0x127   : > { %499 = vst [vmem:[#allocation2 + $0x28] sm:$0xff] %v483_v16 }
 0x128   : > { %v535_v17 = vld [vmem:[#allocation8 + $0x78] sm:$0xff]  ;;  %v534_v18 = vld [vmem:[#allocation8 + $0x70] sm:$0xff]  ;;  %v533_v19 = vld [vmem:[#allocation8 + $0x68] sm:$0xff] }
 0x129   : > { %863 = vmatpush.msra.mxu2 %v535_v17  ;;  %864 = vmatpush.msra.mxu3 %v535_v17  ;;  %v532_v20 = vld [vmem:[#allocation8 + $0x60] sm:$0xff]  ;;  %v531_v21 = vld [vmem:[#allocation8 + $0x58] sm:$0xff]  ;;  %v530_v22 = vld [vmem:[#allocation8 + $0x50] sm:$0xff] }
 0x12a   : > { %540 = vmatpush.msra.mxu0 %v535_v17  ;;  %862 = vmatpush.msra.mxu1 %v535_v17  ;;  %v529_v23 = vld [vmem:[#allocation8 + $0x48] sm:$0xff]  ;;  %v528_v24 = vld [vmem:[#allocation8 + $0x40] sm:$0xff]  ;;  %v527_v25 = vld [vmem:[#allocation8 + $0x38] sm:$0xff] }
 0x12b   : > { %866 = vmatpush.msra.mxu2 %v534_v18  ;;  %867 = vmatpush.msra.mxu3 %v534_v18  ;;  %v526_v26 = vld [vmem:[#allocation8 + $0x30] sm:$0xff]  ;;  %v525_v27 = vld [vmem:[#allocation8 + $0x28] sm:$0xff]  ;;  %v524_v28 = vld [vmem:[#allocation8 + $0x20] sm:$0xff] }
 0x12c   : > { %541 = vmatpush.msra.mxu0 %v534_v18  ;;  %865 = vmatpush.msra.mxu1 %v534_v18  ;;  %v523_v29 = vld [vmem:[#allocation8 + $0x18] sm:$0xff]  ;;  %v522_v30 = vld [vmem:[#allocation8 + $0x10] sm:$0xff]  ;;  %v521_v31 = vld [vmem:[#allocation8 + $0x8] sm:$0xff] }
 0x12d   : > { %869 = vmatpush.msra.mxu2 %v533_v19  ;;  %870 = vmatpush.msra.mxu3 %v533_v19  ;;  %v520_v32 = vld [vmem:[#allocation8] sm:$0xff]  ;;  %v504_v35 = vld [vmem:[#allocation2 + $0x30] sm:$0xff]  ;;  %v509_v40 = vld [vmem:[#allocation2 + $0x68] sm:$0xff] }
 0x12e   : > { %542 = vmatpush.msra.mxu0 %v533_v19  ;;  %868 = vmatpush.msra.mxu1 %v533_v19  ;;  %v512_v33 = vld [vmem:[#allocation2 + $0x40] sm:$0xff]  ;;  %v508_v36 = vld [vmem:[#allocation2 + $0x50] sm:$0xff]  ;;  %v518_v42 = vld [vmem:[#allocation2 + $0x78] sm:$0xff] }
 0x12f   : > { %872 = vmatpush.msra.mxu2 %v532_v20  ;;  %873 = vmatpush.msra.mxu3 %v532_v20  ;;  %v516_v34 = vld [vmem:[#allocation2 + $0x60] sm:$0xff]  ;;  %v517_v38 = vld [vmem:[#allocation2 + $0x70] sm:$0xff]  ;;  %v506_v43 = vld [vmem:[#allocation2 + $0x58] sm:$0xff] }
 0x130   : > { %543 = vmatpush.msra.mxu0 %v532_v20  ;;  %871 = vmatpush.msra.mxu1 %v532_v20  ;;  %v513_v37 = vld [vmem:[#allocation2 + $0x20] sm:$0xff]  ;;  %v514_v41 = vld [vmem:[#allocation2 + $0x10] sm:$0xff]  ;;  %v510_v44 = vld [vmem:[#allocation2 + $0x8] sm:$0xff] }
 0x131   : > { %875 = vmatpush.msra.mxu2 %v531_v21  ;;  %876 = vmatpush.msra.mxu3 %v531_v21  ;;  %v505_v39 = vld [vmem:[#allocation2] sm:$0xff]  ;;  %v515_v45 = vld [vmem:[#allocation2 + $0x38] sm:$0xff]  ;;  %v519_v46 = vld [vmem:[#allocation2 + $0x28] sm:$0xff] }
 0x132   : > { %544 = vmatpush.msra.mxu0 %v531_v21  ;;  %874 = vmatpush.msra.mxu1 %v531_v21  ;;  %v507_v47 = vld [vmem:[#allocation2 + $0x18] sm:$0xff]  ;;  %v511_v48 = vld [vmem:[#allocation2 + $0x48] sm:$0xff]  ;;  %v1059_v49 = vld [vmem:[%s1701_s6] ss:$0 sm:$0xff] }
 0x133   : > { %878 = vmatpush.msra.mxu2 %v530_v22  ;;  %879 = vmatpush.msra.mxu3 %v530_v22 }
 0x134   : > { %545 = vmatpush.msra.mxu0 %v530_v22  ;;  %877 = vmatpush.msra.mxu1 %v530_v22 }
 0x135   : > { %881 = vmatpush.msra.mxu2 %v529_v23  ;;  %882 = vmatpush.msra.mxu3 %v529_v23 }
 0x136   : > { %546 = vmatpush.msra.mxu0 %v529_v23  ;;  %880 = vmatpush.msra.mxu1 %v529_v23 }
 0x137   : > { %884 = vmatpush.msra.mxu2 %v528_v24  ;;  %885 = vmatpush.msra.mxu3 %v528_v24 }
 0x138   : > { %547 = vmatpush.msra.mxu0 %v528_v24  ;;  %883 = vmatpush.msra.mxu1 %v528_v24 }
 0x139   : > { %887 = vmatpush.msra.mxu2 %v527_v25  ;;  %888 = vmatpush.msra.mxu3 %v527_v25 }
 0x13a   : > { %548 = vmatpush.msra.mxu0 %v527_v25  ;;  %886 = vmatpush.msra.mxu1 %v527_v25 }
 0x13b   : > { %890 = vmatpush.msra.mxu2 %v526_v26  ;;  %891 = vmatpush.msra.mxu3 %v526_v26 }
 0x13c   : > { %549 = vmatpush.msra.mxu0 %v526_v26  ;;  %889 = vmatpush.msra.mxu1 %v526_v26 }
 0x13d   : > { %893 = vmatpush.msra.mxu2 %v525_v27  ;;  %894 = vmatpush.msra.mxu3 %v525_v27 }
 0x13e   : > { %550 = vmatpush.msra.mxu0 %v525_v27  ;;  %892 = vmatpush.msra.mxu1 %v525_v27 }
 0x13f   : > { %896 = vmatpush.msra.mxu2 %v524_v28  ;;  %897 = vmatpush.msra.mxu3 %v524_v28 }
 0x140   : > { %551 = vmatpush.msra.mxu0 %v524_v28  ;;  %895 = vmatpush.msra.mxu1 %v524_v28 }
 0x141   : > { %899 = vmatpush.msra.mxu2 %v523_v29  ;;  %900 = vmatpush.msra.mxu3 %v523_v29 }
 0x142   : > { %552 = vmatpush.msra.mxu0 %v523_v29  ;;  %898 = vmatpush.msra.mxu1 %v523_v29 }
 0x143   : > { %902 = vmatpush.msra.mxu2 %v522_v30  ;;  %903 = vmatpush.msra.mxu3 %v522_v30 }
 0x144   : > { %553 = vmatpush.msra.mxu0 %v522_v30  ;;  %901 = vmatpush.msra.mxu1 %v522_v30 }
 0x145   : > { %905 = vmatpush.msra.mxu2 %v521_v31  ;;  %906 = vmatpush.msra.mxu3 %v521_v31 }
 0x146   : > { %554 = vmatpush.msra.mxu0 %v521_v31  ;;  %904 = vmatpush.msra.mxu1 %v521_v31 }
 0x147   : > { %908 = vmatpush.msra.mxu2 %v520_v32  ;;  %909 = vmatpush.msra.mxu3 %v520_v32 }
 0x148   : > { %580 = vmatmul.f32.vlgmr.msra.gmra.mxu2 %v512_v33  ;;  %592 = vmatmul.f32.vlgmr.msra.gmra.mxu3 %v516_v34 }
 0x149   : > { %555 = vmatpush.msra.mxu0 %v520_v32  ;;  %907 = vmatpush.msra.mxu1 %v520_v32 }
 0x14a   : > { %556 = vmatmul.f32.vlgmr.msra.gmra.mxu0 %v504_v35  ;;  %568 = vmatmul.f32.vlgmr.msra.gmra.mxu1 %v508_v36 }
 0x150   : > { %583 = vmatmul.f32.gmra.mxu2 %v513_v37  ;;  %595 = vmatmul.f32.gmra.mxu3 %v517_v38 }
 0x152   : > { %559 = vmatmul.f32.gmra.mxu0 %v505_v39  ;;  %571 = vmatmul.f32.gmra.mxu1 %v509_v40 }
 0x158   : > { %586 = vmatmul.f32.gmra.mxu2 %v514_v41  ;;  %598 = vmatmul.f32.gmra.mxu3 %v518_v42 }
 0x15a   : > { %562 = vmatmul.f32.gmra.mxu0 %v506_v43  ;;  %574 = vmatmul.f32.gmra.mxu1 %v510_v44 }
 0x160   : > { %589 = vmatmul.f32.gmra.mxu2 %v515_v45  ;;  %601 = vmatmul.f32.gmra.mxu3 %v519_v46 }
 0x162   : > { %565 = vmatmul.f32.gmra.mxu0 %v507_v47  ;;  %577 = vmatmul.f32.gmra.mxu1 %v511_v48 }
 0x1c7   : > { %v557_v50 = vpop.f32.mrf.mxu0  ;;  %v569_v51 = vpop.f32.mrf.mxu1 }
 0x1c8   : > { %v558_v52 = vadd.f32 %v1059_v49, %v557_v50  ;;  %v570_v53 = vadd.f32 %v1059_v49, %v569_v51 }
 0x1ca   : > { %v605_v54 = vmax.f32 %v558_v52, 0.0  ;;  %v609_v55 = vmax.f32 %v570_v53, 0.0 }
 0x1cb   : > { %v581_v56 = vpop.f32.mrf.mxu2  ;;  %v593_v57 = vpop.f32.mrf.mxu3 }
 0x1cc   : > { %621 = vst [vmem:[%s1542_s8] sm:$0xff] %v605_v54  ;;  %v582_v58 = vadd.f32 %v1059_v49, %v581_v56  ;;  %v594_v59 = vadd.f32 %v1059_v49, %v593_v57 }
 0x1cd   : > { %625 = vst [vmem:[%s1542_s8 + $0x20] sm:$0xff] %v609_v55 }
 0x1ce   : > { %v613_v60 = vmax.f32 %v582_v58, 0.0  ;;  %v617_v61 = vmax.f32 %v594_v59, 0.0 }
 0x1cf   : > { %v560_v62 = vpop.f32.mrf.mxu0  ;;  %v572_v63 = vpop.f32.mrf.mxu1 }
 0x1d0   : > { %629 = vst [vmem:[%s1542_s8 + $0x40] sm:$0xff] %v613_v60  ;;  %v561_v0 = vadd.f32 %v1059_v49, %v560_v62  ;;  %v573_v1 = vadd.f32 %v1059_v49, %v572_v63 }
 0x1d1   : > { %633 = vst [vmem:[%s1542_s8 + $0x60] sm:$0xff] %v617_v61 }
 0x1d2   : > { %v606_v2 = vmax.f32 %v561_v0, 0.0  ;;  %v610_v3 = vmax.f32 %v573_v1, 0.0 }
 0x1d3   : > { %v584_v4 = vpop.f32.mrf.mxu2  ;;  %v596_v5 = vpop.f32.mrf.mxu3 }
 0x1d4   : > { %622 = vst [vmem:[%s1542_s8 + $0x8] sm:$0xff] %v606_v2  ;;  %v585_v6 = vadd.f32 %v1059_v49, %v584_v4  ;;  %v597_v7 = vadd.f32 %v1059_v49, %v596_v5 }
 0x1d5   : > { %626 = vst [vmem:[%s1542_s8 + $0x28] sm:$0xff] %v610_v3 }
 0x1d6   : > { %v614_v8 = vmax.f32 %v585_v6, 0.0  ;;  %v618_v9 = vmax.f32 %v597_v7, 0.0 }
 0x1d7   : > { %v563_v10 = vpop.f32.mrf.mxu0  ;;  %v575_v11 = vpop.f32.mrf.mxu1 }
 0x1d8   : > { %630 = vst [vmem:[%s1542_s8 + $0x48] sm:$0xff] %v614_v8  ;;  %v564_v12 = vadd.f32 %v1059_v49, %v563_v10  ;;  %v576_v13 = vadd.f32 %v1059_v49, %v575_v11 }
 0x1d9   : > { %634 = vst [vmem:[%s1542_s8 + $0x68] sm:$0xff] %v618_v9 }
 0x1da   : > { %v607_v14 = vmax.f32 %v564_v12, 0.0  ;;  %v611_v15 = vmax.f32 %v576_v13, 0.0 }
 0x1db   : > { %v587_v16 = vpop.f32.mrf.mxu2  ;;  %v599_v17 = vpop.f32.mrf.mxu3 }
 0x1dc   : > { %623 = vst [vmem:[%s1542_s8 + $0x10] sm:$0xff] %v607_v14  ;;  %v588_v18 = vadd.f32 %v1059_v49, %v587_v16  ;;  %v600_v19 = vadd.f32 %v1059_v49, %v599_v17 }
 0x1dd   : > { %627 = vst [vmem:[%s1542_s8 + $0x30] sm:$0xff] %v611_v15 }
 0x1de   : > { %v615_v20 = vmax.f32 %v588_v18, 0.0  ;;  %v619_v21 = vmax.f32 %v600_v19, 0.0 }
 0x1df   : > { %v566_v22 = vpop.f32.mrf.mxu0  ;;  %v578_v23 = vpop.f32.mrf.mxu1 }
 0x1e0   : > { %631 = vst [vmem:[%s1542_s8 + $0x50] sm:$0xff] %v615_v20  ;;  %v567_v24 = vadd.f32 %v1059_v49, %v566_v22  ;;  %v579_v25 = vadd.f32 %v1059_v49, %v578_v23 }
 0x1e1   : > { %635 = vst [vmem:[%s1542_s8 + $0x70] sm:$0xff] %v619_v21 }
 0x1e2   : > { %v608_v26 = vmax.f32 %v567_v24, 0.0  ;;  %v612_v27 = vmax.f32 %v579_v25, 0.0 }
 0x1e3   : > { %v590_v28 = vpop.f32.mrf.mxu2  ;;  %v602_v29 = vpop.f32.mrf.mxu3 }
 0x1e4   : > { %624 = vst [vmem:[%s1542_s8 + $0x18] sm:$0xff] %v608_v26  ;;  %v591_v30 = vadd.f32 %v1059_v49, %v590_v28  ;;  %v603_v31 = vadd.f32 %v1059_v49, %v602_v29 }
 0x1e5   : > { %628 = vst [vmem:[%s1542_s8 + $0x38] sm:$0xff] %v612_v27 }
 0x1e6   : > { %v616_v32 = vmax.f32 %v591_v30, 0.0  ;;  %v620_v33 = vmax.f32 %v603_v31, 0.0 }
 0x1e8   : > { %632 = vst [vmem:[%s1542_s8 + $0x58] sm:$0xff] %v616_v32 }
 0x1e9   : > { %636 = vst [vmem:[%s1542_s8 + $0x78] sm:$0xff] %v620_v33 }
 0x1ea PF: > { %s1702_s25 = sld [smem:[#allocation17_spill]]  ;;  %s650_s13 = sshll.u32 %s1542_s8, 4  ;;  %s651_s13 = int_to_ptr.vmem [resolvable:$true] %s650_s13 }
 0x1eb   : > { %s1704_s21 = sld [smem:[#allocation28_spill]]  ;;  %s638_s11 = scalar_lea.sflag [#allocation5], %s289_s5 }
 0x1f0   : > { %s837_s12 = sshll.u32 %s1702_s25, 7 }
 0x1f1   : > { %s1705_s4 = smov %s1704_s21  ;;  %s649_s10 = scalar_lea.hbm %s1704_s21, %s837_s12 }
 0x1f2   : > { %s652_s14 = sshll.u32 %s649_s10, 4  ;;  %s1170_s23 = scalar_lea.hbm %s1705_s4, 256  ;;  %s653_s14 = int_to_ptr.hbm [resolvable:$true] %s652_s14 }
 0x1f3   : > { %s1164_s18 = sshra.s32 %s653_s14, 4  ;;  %s1165_s18 = int_to_ptr.hbm [resolvable:$true] %s1164_s18 }
 0x1f4   : > { %s1166_s15 = scalar_lea.hbm %s1165_s18, 128  ;;  %p1171_p11 = scmp.lt.s32.totalorder %s1165_s18, %s1705_s4 }
 0x1f5   : > { %p1167_p6 = scmp.ne.s32.totalorder %s1165_s18, %s1166_s15  ;;  %p1172_p0 = scmp.lt.s32.totalorder %s1170_s23, %s1166_s15 }
 0x1f7   : > { %p1168_p13 = pnand %p1167_p6, %p1429_p8  ;;  %p1173_p3 = por %p1172_p0, %p1171_p11 }
 0x1f9   : > { %p1169_p7 = pneg %p1168_p13 }
 0x1fb   : > { %p1174_p5 = pnand %p1173_p3, %p1169_p7 }
 0x1fd   : > { %1177 = shalt.err (!%p1174_p5)
}
 0x1fe   : > { %s1312_s5 = smov 128   ;;  %s1313_s8 = smov 8  }
 0x1ff   : > { %918 = dma.vmem_to_hbm [thread:$0]  (%p1429_p8), %s651_s13, 2048, %s653_s14, %s638_s11, %s1312_s5, %s1312_s5, %s1313_s8  }
 0x200 PF: > { %s1706_s24 = sld [smem:[#allocation14_spill]]  ;;  %p938_p10 = scmp.ge.s32.totalorder %s1304_s28, 2 }
 0x202   : > { %p932_p2 = pnand %p938_p10, %p1435_p12 }
 0x204   : > { %p933_p9 = pneg %p932_p2 }
 0x206   : > { %s667_s6 = sand.u32 1, %s1706_s24  }
 0x207   : > { %s668_s25 = scalar_lea.sflag [#allocation5], %s667_s6 }
 0x208   : > { %1247 = dma.done.wait (%p933_p9), %s668_s25, 2048  }
 0x209   : > { %1249 = vsyncadd (%p933_p9), %s668_s25, 4294965248  ;;  %s23_s28 = sadd.s32 1, %s1304_s28   ;;  %s1709_s27 = sld [smem:[#allocation15_spill]] }
 0x20a   : > { %p1611_p4 = scmp.ge.s32.totalorder %s23_s28, 6   ;;  %s1710_s17 = sld [smem:[#allocation23_spill]] }
 0x20b   : > { %s1711_s2 = sld [smem:[#allocation16_spill]]  ;;  %s1716_s15 = smov %s1256_s16 }
 0x20c   : > { %s1712_s23 = sld [smem:[#allocation24_spill]]  ;;  %s1718_s18 = smov %s1268_s19 }
 0x20d   : > { %s1713_s25 = sld [smem:[#allocation18_spill]]  ;;  %s1719_s19 = smov %s1272_s20 }
 0x20e   : > { %s1714_s30 = sld [smem:[#allocation21_spill]]  ;;  %s1720_s20 = smov %s1504_s3 }
 0x20f   : > { %s1715_s10 = sld [smem:[#allocation22_spill]]  ;;  %s1717_s16 = smov %s1709_s27 }
 0x210   : > { %s1721_s21 = smov %s1280_s22  ;;  %s1723_s24 = smov %s1296_s26 }
 0x211   : > { %s1722_s22 = smov %s1711_s2  ;;  %22 = sbr.rel (!%p1611_p4) target bundleno = 17 (0x11), region = 106 }
 0x214   : > { %s1724_s26 = smov %s1714_s30 }
 0x215   : > { %s1725_s27 = smov %s1715_s10 }
 0x216   :  { %674 = vsyncpa [#allocation4], 1 }
 0x217   :  { %676 = vsyncpa [#allocation4 + $0x1], 1 }
 0x218   :  { %677 = vsyncpa [#allocation7], 1 }
 0x219   :  { %679 = vsyncpa [#allocation7 + $0x1], 1 }
 0x21a   :  { %680 = vsyncpa [#allocation5], 1 }
 0x21b   :  { %682 = vsyncpa [#allocation5 + $0x1], 1 }

</bundles_post_ra>
